<compile_context>
chip_gen: v7x
topology: tpu7x:2x2x1
jax: 0.10.0
libtpu: 0.0.40
codegen_flags: <defaults>
</compile_context>

<pallas_src>
import functools

import numpy as np
import jax
import jax.numpy as jnp
from jax.experimental import pallas as pl
from jax.experimental.pallas import tpu as pltpu

_VMEM_LIMIT = 32 * 1024 * 1024


# ----------------------------- small static helpers -----------------------------

def _whole_spec(shape):
    nd = len(shape)
    return pl.BlockSpec(tuple(shape), lambda *args, _nd=nd: (0,) * _nd)


def _pick_tile(L, max_tile=2048):
    """Largest multiple of 128 that divides L (capped), else the whole extent."""
    if L % 128 != 0:
        return L
    t = min(max_tile, L)
    t -= t % 128
    while t >= 128:
        if L % t == 0:
            return t
        t -= 128
    return L


def _conv3x3_mask(H, W):
    """(9, H*W) validity mask for 'same' 3x3 taps (zero padding)."""
    hh = np.arange(H)[:, None]
    ww = np.arange(W)[None, :]
    m = np.zeros((9, H * W), np.float32)
    for kh in range(3):
        for kw in range(3):
            valid = ((hh + kh - 1 >= 0) & (hh + kh - 1 < H)
                     & (ww + kw - 1 >= 0) & (ww + kw - 1 < W))
            m[kh * 3 + kw] = valid.reshape(-1).astype(np.float32)
    return m


def _dw_select_np(H, W):
    """Stacked 0/1 tap-selection matrix (H*W, 9*Ho*Wo) for a stride-2 pad-1 3x3 conv."""
    Ho, Wo = (H - 1) // 2 + 1, (W - 1) // 2 + 1
    Lo = Ho * Wo
    s = np.zeros((H * W, 9 * Lo), np.float32)
    for kh in range(3):
        for kw in range(3):
            t = kh * 3 + kw
            for ho in range(Ho):
                hi = 2 * ho + kh - 1
                if hi < 0 or hi >= H:
                    continue
                for wo in range(Wo):
                    wi = 2 * wo + kw - 1
                    if wi < 0 or wi >= W:
                        continue
                    s[hi * W + wi, t * Lo + ho * Wo + wo] = 1.0
    return s, Ho, Wo


def _interp_matrix_np(out_size, in_size):
    """Bilinear align_corners=True interpolation matrix (out_size, in_size)."""
    if in_size == 1:
        return np.ones((out_size, 1), np.float32)
    idx = np.arange(out_size, dtype=np.float64)
    src = idx * (in_size - 1) / max(out_size - 1, 1)
    i0 = np.clip(np.floor(src).astype(np.int64), 0, in_size - 1)
    i1 = np.minimum(i0 + 1, in_size - 1)
    w1 = src - i0
    r = np.zeros((out_size, in_size), np.float64)
    r[np.arange(out_size), i0] += 1.0 - w1
    r[np.arange(out_size), i1] += w1
    return r.astype(np.float32)


# pltpu.roll convention probe (matches np.roll on current toolchains; probed once,
# eagerly, so the conv tap orientation is guaranteed correct either way).
_ROLL_SIGN = None


def _get_roll_sign():
    global _ROLL_SIGN
    if _ROLL_SIGN is None:
        def probe(x_ref, o_ref):
            o_ref[...] = pltpu.roll(x_ref[...], 1, 1)

        x = jnp.tile(jnp.arange(128, dtype=jnp.float32)[None, :], (8, 1))
        out = pl.pallas_call(
            probe, out_shape=jax.ShapeDtypeStruct((8, 128), jnp.float32))(x)
        _ROLL_SIGN = -1 if float(out[0, 1]) == 0.0 else 1
    return _ROLL_SIGN


# ----------------------------- Pallas kernels ------------------------------

def _conv3x3_kernel(n_in, has_post, img_w, roll_sign, *refs):
    """relu(conv3x3(cat(xs))) as ONE im2col GEMM; optional fused trailing 1x1 (+bias).

    x_i : (Cin_i, Lb) slab, taps realized with circular lane rolls + validity masks,
          concatenated along the contraction axis -> (9*sum(Cin), Lb).
    w   : (Cout, 9*sum(Cin)) bf16 im2col weight; mask: (9, Lb) f32;
    post: (Cpost, Cout) bf16, (Cpost, 1) f32.
    """
    xs = refs[:n_in]
    w_ref = refs[n_in]
    m_ref = refs[n_in + 1]
    idx = n_in + 2
    pw_ref = pb_ref = None
    if has_post:
        pw_ref, pb_ref = refs[idx], refs[idx + 1]
        idx += 2
    o_ref = refs[idx]

    lb = xs[0].shape[-1]
    m = m_ref[...]                                        # hoisted mask load
    taps = []
    for j in range(n_in):
        xv = xs[j][...]
        for kh in range(3):
            for kw in range(3):
                t = kh * 3 + kw
                off = (kh - 1) * img_w + (kw - 1)          # flat source offset of this tap
                s = (roll_sign * off) % lb
                xr = xv if s == 0 else pltpu.roll(xv, s, 1)
                if t != 4:                                 # center tap is always valid
                    xr = xr * m[t:t + 1, :]
                taps.append(xr)
    col = jnp.concatenate(taps, axis=0).astype(jnp.bfloat16)   # (9*sumCin, Lb)
    acc = jnp.dot(w_ref[...], col, preferred_element_type=jnp.float32)
    acc = jnp.maximum(acc, 0.0)                            # all 3x3 convs here are conv+ReLU
    if has_post:
        acc = jnp.dot(pw_ref[...], acc.astype(jnp.bfloat16),
                      preferred_element_type=jnp.float32) + pb_ref[...]
    o_ref[...] = acc


def _local_branch_kernel(x_ref, s1_ref, s2_ref, s3_ref, w0_ref, w1_ref, w2_ref, o_ref,
                         *, l1, l2, l3):
    """Three fused stride-2 3x3 depthwise convs on one image (taps via selection GEMMs)."""
    def dw(xin, s_ref, w_ref, lout):
        taps = jnp.dot(xin.astype(jnp.bfloat16), s_ref[...],
                       preferred_element_type=jnp.float32)        # (C, 9*lout)
        w = w_ref[...]
        acc = taps[:, 0:lout] * w[:, 0:1]
        for t in range(1, 9):
            acc = acc + taps[:, t * lout:(t + 1) * lout] * w[:, t:t + 1]
        return acc

    y = dw(x_ref[...], s1_ref, w0_ref, l1)
    y = dw(y, s2_ref, w1_ref, l2)
    y = dw(y, s3_ref, w2_ref, l3)
    o_ref[0] = y                                                  # (C, l3)


def _sgcn_core_kernel(loc_ref, wkvq_ref, bkvq_ref, wwg_ref, gwg_ref, bwg_ref,
                      wout_ref, bout_ref, sg_ref, avw_ref, *, n_batch, inter, eps):
    """SpatialGCN on the 1/64-resolution local feature (tiny, cross-batch BN inside)."""
    lloc = loc_ref.shape[2]
    wkvq = wkvq_ref[...]
    bkvq = bkvq_ref[...]
    wwg = wwg_ref[...]

    s1 = jnp.zeros((inter, 1), jnp.float32)
    s2 = jnp.zeros((inter, 1), jnp.float32)
    for b in range(n_batch):
        loc_b = loc_ref[b]                                               # (P, lloc)
        kvq = jnp.dot(wkvq, loc_b.astype(jnp.bfloat16),
                      preferred_element_type=jnp.float32) + bkvq
        k_b = kvq[0:inter]
        v_b = kvq[inter:2 * inter]
        q_b = kvq[2 * inter:3 * inter]
        # S^T = v @ q^T  (S = node_q @ node_v of the reference)
        st = jax.lax.dot_general(v_b.astype(jnp.bfloat16), q_b.astype(jnp.bfloat16),
                                 (((1,), (1,)), ((), ())),
                                 preferred_element_type=jnp.float32)     # (inter, inter)
        st = st - jnp.max(st, axis=0, keepdims=True)
        e = jnp.exp(st)
        p_soft = e * pl.reciprocal(jnp.sum(e, axis=0, keepdims=True), approx=True)
        avt = jnp.dot(p_soft.astype(jnp.bfloat16), k_b.astype(jnp.bfloat16),
                      preferred_element_type=jnp.float32)                # (inter, lloc)
        avw = jnp.dot(wwg, avt.astype(jnp.bfloat16),
                      preferred_element_type=jnp.float32)                # conv_wg
        avw_ref[b] = avw                                                 # retained in scratch
        s1 = s1 + jnp.sum(avw, axis=1, keepdims=True)                    # one-pass BN stats
        s2 = s2 + jnp.sum(avw * avw, axis=1, keepdims=True)

    # BatchNorm1d(inter), training-mode batch stats over (batch, hw)
    cnt = float(n_batch * lloc)
    mean = s1 / cnt
    var = s2 / cnt - mean * mean
    inv = jax.lax.rsqrt(var + eps)

    wout = wout_ref[...]
    bout = bout_ref[...]
    gwg = gwg_ref[...]
    bwg = bwg_ref[...]
    for b in range(n_batch):
        a_n = (avw_ref[b] - mean) * inv * gwg + bwg
        sg = jnp.dot(wout, a_n.astype(jnp.bfloat16),
                     preferred_element_type=jnp.float32) + bout + loc_ref[b]
        sg_ref[b] = jnp.maximum(sg, 0.0)                                 # (P, lloc)


def _sgu_kernel(x_ref, sg_ref, rt_ref, wpt_ref, slf_ref, zidt_ref, *, c1, c2):
    """Per (batch, lane-tile): bilinear upsample + x*local + x, and the graph branch's
    phi/theta projection with partial z_idt = phi(x) @ theta(x)^T reduction."""
    j = pl.program_id(1)
    x = x_ref[...]                                                  # (P, tile) f32
    xb = x.astype(jnp.bfloat16)

    up = jnp.dot(sg_ref[0].astype(jnp.bfloat16), rt_ref[...],
                 preferred_element_type=jnp.float32)                # (P, tile)
    slf_ref[...] = x * up + x                                       # spatial_local_feat

    pt = jnp.dot(wpt_ref[...], xb, preferred_element_type=jnp.float32)   # (c2+c1, tile)
    zi = jax.lax.dot_general(pt[0:c2].astype(jnp.bfloat16),
                             pt[c2:c2 + c1].astype(jnp.bfloat16),
                             (((1,), (1,)), ((), ())),
                             preferred_element_type=jnp.float32)    # (c2, c1)

    @pl.when(j == 0)
    def _():
        zidt_ref[...] = jnp.zeros_like(zidt_ref)

    zidt_ref[...] += zi[None]


def _graph_out_kernel(x_ref, slf_ref, z2_ref, wth_ref, wc3_ref, wf1_ref, wf2_ref, o_ref):
    """Per (batch, lane-tile): y = z2 @ theta(x), conv3 + residual ReLU, final 1x1 over
    concat(spatial_local_feat, g_out) without materializing the concat."""
    x = x_ref[...]
    xb = x.astype(jnp.bfloat16)
    bb = jnp.dot(wth_ref[...], xb, preferred_element_type=jnp.float32)      # theta(x)
    y = jnp.dot(z2_ref[0].astype(jnp.bfloat16), bb.astype(jnp.bfloat16),
                preferred_element_type=jnp.float32)                         # (c2, tile)
    g = jnp.dot(wc3_ref[...], y.astype(jnp.bfloat16),
                preferred_element_type=jnp.float32) + x
    g = jnp.maximum(g, 0.0)                                                 # g_out
    o_ref[...] = (jnp.dot(wf1_ref[...], slf_ref[...].astype(jnp.bfloat16),
                          preferred_element_type=jnp.float32)
                  + jnp.dot(wf2_ref[...], g.astype(jnp.bfloat16),
                            preferred_element_type=jnp.float32))


# ------------------------------- wrappers ----------------------------------

def _conv3x3_relu(xs, ws, n, H, W, post=None):
    """relu(conv3x3(cat(xs), cat(ws))) [+ fused 1x1 conv + bias]; xs: list of (Cin_i, N*H*W)."""
    L = H * W
    M = n * L
    n_in = len(xs)
    cout = ws[0].shape[0]
    wcols = []
    for w in ws:
        cin = w.shape[1]
        wcols.append(jnp.transpose(w.astype(jnp.float32), (0, 2, 3, 1)).reshape(cout, 9 * cin))
    wcat = jnp.concatenate(wcols, axis=1).astype(jnp.bfloat16)       # (Cout, 9*sumCin)
    mask_np = _conv3x3_mask(H, W)
    if L % 128 == 0:
        grid_n, lb = n, L                      # per-image lane blocks -> parallel grid
        mask = jnp.asarray(mask_np)
    else:
        grid_n, lb = 1, M                      # fallback: whole-array block
        mask = jnp.asarray(np.tile(mask_np, (1, n)))
    has_post = post is not None
    cfin = post[0].shape[0] if has_post else cout

    in_specs, args = [], []
    for x in xs:
        in_specs.append(pl.BlockSpec((x.shape[0], lb), lambda i: (0, i)))
        args.append(x)
    in_specs.append(pl.BlockSpec(wcat.shape, lambda i: (0, 0)))
    args.append(wcat)
    in_specs.append(pl.BlockSpec((9, lb), lambda i: (0, 0)))
    args.append(mask)
    if has_post:
        pw, pb = post
        in_specs.append(pl.BlockSpec(pw.shape, lambda i: (0, 0)))
        args.append(pw.astype(jnp.bfloat16))
        in_specs.append(pl.BlockSpec(pb.shape, lambda i: (0, 0)))
        args.append(pb)

    kernel = functools.partial(_conv3x3_kernel, n_in, has_post, W, _get_roll_sign())
    return pl.pallas_call(
        kernel,
        out_shape=jax.ShapeDtypeStruct((cfin, M), jnp.float32),
        grid=(grid_n,),
        in_specs=in_specs,
        out_specs=pl.BlockSpec((cfin, lb), lambda i: (0, i)),
        compiler_params=pltpu.CompilerParams(
            dimension_semantics=("parallel",) if grid_n > 1 else ("arbitrary",),
            vmem_limit_bytes=_VMEM_LIMIT),
    )(*args)


def _local_branch(feat, p, n, H, W):
    """All three stride-2 depthwise 3x3 convs in one batch-parallel pallas_call."""
    P_ = feat.shape[0]
    L = H * W
    s1_np, H1, W1 = _dw_select_np(H, W)
    s2_np, H2, W2 = _dw_select_np(H1, W1)
    s3_np, H3, W3 = _dw_select_np(H2, W2)
    l1, l2, l3 = H1 * W1, H2 * W2, H3 * W3
    s1 = jnp.asarray(s1_np, jnp.bfloat16)                 # 0/1 entries: exact in bf16
    s2 = jnp.asarray(s2_np, jnp.bfloat16)
    s3 = jnp.asarray(s3_np, jnp.bfloat16)
    w0 = p['local0_w'][:, 0].reshape(P_, 9).astype(jnp.float32)
    w1 = p['local1_w'][:, 0].reshape(P_, 9).astype(jnp.float32)
    w2 = p['local2_w'][:, 0].reshape(P_, 9).astype(jnp.float32)

    kernel = functools.partial(_local_branch_kernel, l1=l1, l2=l2, l3=l3)
    loc = pl.pallas_call(
        kernel,
        out_shape=jax.ShapeDtypeStruct((n, P_, l3), jnp.float32),
        grid=(n,),
        in_specs=[
            pl.BlockSpec((P_, L), lambda b: (0, b)),
            pl.BlockSpec(s1.shape, lambda b: (0, 0)),
            pl.BlockSpec(s2.shape, lambda b: (0, 0)),
            pl.BlockSpec(s3.shape, lambda b: (0, 0)),
            pl.BlockSpec((P_, 9), lambda b: (0, 0)),
            pl.BlockSpec((P_, 9), lambda b: (0, 0)),
            pl.BlockSpec((P_, 9), lambda b: (0, 0)),
        ],
        out_specs=pl.BlockSpec((1, P_, l3), lambda b: (b, 0, 0)),
        compiler_params=pltpu.CompilerParams(
            dimension_semantics=("parallel",), vmem_limit_bytes=_VMEM_LIMIT),
    )(feat, s1, s2, s3, w0, w1, w2)
    return loc, H3, W3


def _sgcn_core(loc, p, n):
    """SpatialGCN on the downsampled local feature -> per-batch 'sg' (pre-upsample)."""
    P_ = loc.shape[1]
    inter = P_ // 2
    lloc = loc.shape[2]
    wkvq = jnp.concatenate([p['sg_node_k_w'].reshape(inter, P_),
                            p['sg_node_v_w'].reshape(inter, P_),
                            p['sg_node_q_w'].reshape(inter, P_)], axis=0).astype(jnp.bfloat16)
    bkvq = jnp.concatenate([p['sg_node_k_b'], p['sg_node_v_b'],
                            p['sg_node_q_b']]).reshape(3 * inter, 1)
    wwg = p['sg_conv_wg_w'].reshape(inter, inter).astype(jnp.bfloat16)
    gwg = p['sg_bn_wg_g'].reshape(inter, 1)
    bwg = p['sg_bn_wg_b'].reshape(inter, 1)
    wout = p['sg_out_w'].reshape(P_, inter).astype(jnp.bfloat16)
    bout = p['sg_out_b'].reshape(P_, 1)

    kernel = functools.partial(_sgcn_core_kernel, n_batch=n, inter=inter, eps=1e-5)
    args = [loc, wkvq, bkvq, wwg, gwg, bwg, wout, bout]
    return pl.pallas_call(
        kernel,
        out_shape=jax.ShapeDtypeStruct((n, P_, lloc), jnp.float32),
        grid=(1,),
        in_specs=[_whole_spec(a.shape) for a in args],
        out_specs=_whole_spec((n, P_, lloc)),
        scratch_shapes=[pltpu.VMEM((n, inter, lloc), jnp.float32)],
        compiler_params=pltpu.CompilerParams(
            dimension_semantics=("arbitrary",), vmem_limit_bytes=_VMEM_LIMIT),
    )(*args)


def _sgcn_upsample_graph_proj(feat, sg, p, n, h_loc, w_loc, H, W):
    """Fused: bilinear upsample + spatial_local_feat AND the z_idt reduction (streams x once)."""
    P_ = feat.shape[0]
    c2 = p['phi_w'].shape[0]
    c1 = p['theta_w'].shape[0]
    L = H * W
    lloc = h_loc * w_loc
    tile = _pick_tile(L)
    ntiles = L // tile

    rt = jnp.asarray(np.ascontiguousarray(
        np.kron(_interp_matrix_np(H, h_loc),
                _interp_matrix_np(W, w_loc)).T)).astype(jnp.bfloat16)        # (lloc, L)
    wpt = jnp.concatenate([p['phi_w'].reshape(c2, P_),
                           p['theta_w'].reshape(c1, P_)], axis=0).astype(jnp.bfloat16)

    kernel = functools.partial(_sgu_kernel, c1=c1, c2=c2)
    slf, zidt = pl.pallas_call(
        kernel,
        out_shape=(jax.ShapeDtypeStruct((P_, n * L), jnp.float32),
                   jax.ShapeDtypeStruct((n, c2, c1), jnp.float32)),
        grid=(n, ntiles),
        in_specs=[
            pl.BlockSpec((P_, tile), lambda b, j, nt=ntiles: (0, b * nt + j)),
            pl.BlockSpec((1, P_, lloc), lambda b, j: (b, 0, 0)),
            pl.BlockSpec((lloc, tile), lambda b, j: (0, j)),
            pl.BlockSpec((c2 + c1, P_), lambda b, j: (0, 0)),
        ],
        out_specs=(
            pl.BlockSpec((P_, tile), lambda b, j, nt=ntiles: (0, b * nt + j)),
            pl.BlockSpec((1, c2, c1), lambda b, j: (b, 0, 0)),
        ),
        compiler_params=pltpu.CompilerParams(
            dimension_semantics=("parallel", "arbitrary"),
            vmem_limit_bytes=_VMEM_LIMIT),
    )(feat, sg, rt, wpt)
    return slf, zidt


def _adjacency_combine(zidt, p, eps=1e-5):
    """Tiny (N, c2, c1) adjacency chain + the two cross-batch BatchNorms (plain jnp)."""
    c2, c1 = zidt.shape[1], zidt.shape[2]
    wadj = p['conv_adj_w'].reshape(c1, c1)
    z1 = jnp.einsum('bij,kj->bik', zidt, wadj)                       # conv_adj (over c1)
    m1 = jnp.mean(z1, axis=(0, 1), keepdims=True)                    # bn_adj: stats (b, c2)
    v1 = jnp.mean(jnp.square(z1 - m1), axis=(0, 1), keepdims=True)
    z = ((z1 - m1) * jax.lax.rsqrt(v1 + eps) * p['bn_adj_g'].reshape(1, 1, c1)
         + p['bn_adj_b'].reshape(1, 1, c1) + zidt)
    wwg = p['conv_wg_w'].reshape(c2, c2)
    zw = jnp.einsum('ij,bjk->bik', wwg, z)                           # conv_wg (over c2)
    m2 = jnp.mean(zw, axis=(0, 2), keepdims=True)                    # bn_wg: stats (b, c1)
    v2 = jnp.mean(jnp.square(zw - m2), axis=(0, 2), keepdims=True)
    z2 = ((zw - m2) * jax.lax.rsqrt(v2 + eps) * p['bn_wg_g'].reshape(1, c2, 1)
          + p['bn_wg_b'].reshape(1, c2, 1))
    return z2


def _graph_out(feat, slf, z2, p, n, H, W):
    """Graph-branch tail + final 1x1 over concat(slf, g_out); fully parallel grid."""
    P_ = feat.shape[0]
    c2, c1 = z2.shape[1], z2.shape[2]
    L = H * W
    tile = _pick_tile(L)
    ntiles = L // tile
    wth = p['theta_w'].reshape(c1, P_).astype(jnp.bfloat16)
    wc3 = p['conv3_w'].reshape(P_, c2).astype(jnp.bfloat16)
    wfin = p['final_w'].reshape(p['final_w'].shape[0], 2 * P_)
    wf1 = wfin[:, :P_].astype(jnp.bfloat16)
    wf2 = wfin[:, P_:].astype(jnp.bfloat16)
    cfin = wfin.shape[0]

    return pl.pallas_call(
        _graph_out_kernel,
        out_shape=jax.ShapeDtypeStruct((cfin, n * L), jnp.float32),
        grid=(n, ntiles),
        in_specs=[
            pl.BlockSpec((P_, tile), lambda b, j, nt=ntiles: (0, b * nt + j)),
            pl.BlockSpec((P_, tile), lambda b, j, nt=ntiles: (0, b * nt + j)),
            pl.BlockSpec((1, c2, c1), lambda b, j: (b, 0, 0)),
            pl.BlockSpec((c1, P_), lambda b, j: (0, 0)),
            pl.BlockSpec((P_, c2), lambda b, j: (0, 0)),
            pl.BlockSpec((cfin, P_), lambda b, j: (0, 0)),
            pl.BlockSpec((cfin, P_), lambda b, j: (0, 0)),
        ],
        out_specs=pl.BlockSpec((cfin, tile), lambda b, j, nt=ntiles: (0, b * nt + j)),
        compiler_params=pltpu.CompilerParams(
            dimension_semantics=("parallel", "parallel"),
            vmem_limit_bytes=_VMEM_LIMIT),
    )(feat, slf, z2, wth, wc3, wf1, wf2)


# ------------------------------- model forward ------------------------------

def dualgcn_parallel_forward(x_nchw, p):
    x_nchw = x_nchw.astype(jnp.float32)
    N, cin, H, W = x_nchw.shape
    M = N * H * W
    x0 = jnp.transpose(x_nchw, (1, 0, 2, 3)).reshape(cin, M)            # NCHW -> (C, N*H*W)

    # conva: 3x3 conv + ReLU
    feat = _conv3x3_relu([x0], [p['conva_w']], N, H, W)                  # (P, M)
    P_ = feat.shape[0]

    # ---- DualGCN ----
    loc, h_l, w_l = _local_branch(feat, p, N, H, W)                      # 3 depthwise convs
    sg = _sgcn_core(loc, p, N)                                           # SpatialGCN core
    slf, zidt = _sgcn_upsample_graph_proj(feat, sg, p, N, h_l, w_l, H, W)
    z2 = _adjacency_combine(zidt, p)                                     # tiny cross-batch BN
    dg = _graph_out(feat, slf, z2, p, N, H, W)                           # (P, M)

    # convb: 3x3 conv + ReLU
    out = _conv3x3_relu([dg], [p['convb_w']], N, H, W)

    # bottleneck: 3x3 conv on cat([x, out]) + ReLU, then 1x1 conv + bias (fused epilogue)
    w_b0 = p['bottleneck0_w']
    post_w = p['bottleneck2_w'].reshape(p['bottleneck2_w'].shape[0], P_)
    post_b = p['bottleneck2_b'].reshape(-1, 1)
    out = _conv3x3_relu([x0, out], [w_b0[:, :cin], w_b0[:, cin:]], N, H, W,
                        post=(post_w, post_b))                           # (outplanes, M)
    cout = out.shape[0]
    return jnp.transpose(out.reshape(cout, N, H, W), (1, 0, 2, 3))       # -> NCHW


# ------------------------------- parameters ---------------------------------

def init_params(inplanes, interplanes, outplanes, key):
    P = interplanes
    C1 = P // 4
    C2 = C1 * 2
    inter = P // 2
    keys = iter(jax.random.split(key, 64))

    def w(shape, scale=0.1):
        return jax.random.normal(next(keys), shape, jnp.float32) * scale

    return {
        'conva_w': w((P, inplanes, 3, 3)),
        'convb_w': w((P, P, 3, 3)),
        'bottleneck0_w': w((P, inplanes + P, 3, 3)),
        'bottleneck2_w': w((outplanes, P, 1, 1)),
        'bottleneck2_b': w((outplanes,)),
        # DualGCN
        'phi_w': w((C2, P, 1, 1)),
        'theta_w': w((C1, P, 1, 1)),
        'conv_adj_w': w((C1, C1, 1)),
        'bn_adj_g': jnp.ones((C1,), jnp.float32),
        'bn_adj_b': jnp.zeros((C1,), jnp.float32),
        'conv_wg_w': w((C2, C2, 1)),
        'bn_wg_g': jnp.ones((C2,), jnp.float32),
        'bn_wg_b': jnp.zeros((C2,), jnp.float32),
        'conv3_w': w((P, C2, 1, 1)),
        'local0_w': w((P, 1, 3, 3)),
        'local1_w': w((P, 1, 3, 3)),
        'local2_w': w((P, 1, 3, 3)),
        'final_w': w((P, 2 * P, 1, 1)),
        # SpatialGCN(P)
        'sg_node_k_w': w((inter, P, 1, 1)), 'sg_node_k_b': w((inter,)),
        'sg_node_v_w': w((inter, P, 1, 1)), 'sg_node_v_b': w((inter,)),
        'sg_node_q_w': w((inter, P, 1, 1)), 'sg_node_q_b': w((inter,)),
        'sg_conv_wg_w': w((inter, inter, 1)),
        'sg_bn_wg_g': jnp.ones((inter,), jnp.float32),
        'sg_bn_wg_b': jnp.zeros((inter,), jnp.float32),
        'sg_out_w': w((P, inter, 1, 1)), 'sg_out_b': w((P,)),
    }


if __name__ == "__main__":
    inplanes, interplanes, outplanes = 8, 32, 24
    N, H, W = 2, 16, 16

    _get_roll_sign()  # probe the hardware roll convention once, eagerly, before tracing

    key = jax.random.PRNGKey(0)
    kx, kp = jax.random.split(key)
    x = jax.random.normal(kx, (N, inplanes, H, W), jnp.float32)
    params = init_params(inplanes, interplanes, outplanes, kp)

    fwd = jax.jit(dualgcn_parallel_forward)
    out = jax.block_until_ready(fwd(x, params))

    assert out.shape == (N, outplanes, H, W), out.shape
    assert bool(jnp.all(jnp.isfinite(out)))
    print("KERNEL_OK")
</pallas_src>

<mosaic_0001>
module attributes {stable_mosaic.version = 11 : i64} {
  func.func @probe(%arg0: memref<8x128xf32, #tpu.memory_space<vmem>>, %arg1: memref<8x128xf32, #tpu.memory_space<vmem>>) attributes {dimension_semantics = [], scalar_prefetch = 0 : i64, scratch_operands = 0 : i64, tpu.core_type = #tpu.core_type<tc>} {
    %c0 = arith.constant 0 : index
    %c0_0 = arith.constant 0 : index
    %0 = vector.load %arg0[%c0, %c0_0] : memref<8x128xf32, #tpu.memory_space<vmem>>, vector<8x128xf32>
    %c1_i32 = arith.constant 1 : i32
    %1 = tpu.dynamic_rotate %0 by %c1_i32 dim 1 : vector<8x128xf32>, i32 -> vector<8x128xf32>
    %c0_1 = arith.constant 0 : index
    %c0_2 = arith.constant 0 : index
    %2 = vector.load %arg1[%c0_1, %c0_2] : memref<8x128xf32, #tpu.memory_space<vmem>>, vector<8x128xf32>
    tpu.vector_store %arg1[%c0_1, %c0_2], %1 {strides = array<i32>} : memref<8x128xf32, #tpu.memory_space<vmem>>, vector<8x128xf32>,
    return
  }
}

</mosaic_0001>

<bundles_post_ra>
// kernel: tpu_custom_call.1
= control target key start
LH: loop header
LB: loop body
LE: loop exit
PB: predicated region body
PF: predicated region fallthrough
CT: control target
= control target key end

     0   :  { %6 = vsyncpa [#allocation3], 0  ;;  %s128_s0 = inlined_call_operand.hbm [shape: f32[8,128], index: 0, kind: input, shape index: {}]   ;;  %s129_s1 = inlined_call_operand.hbm [shape: f32[8,128], index: 1, kind: output, shape index: {}]  }
   0x1   :  { %7 = vsyncpa [#allocation4], 0  ;;  %s91_s6 = smov [#allocation2]   ;;  %s43_s10 = scalar_lea.hbm %s128_s0, 128 }
   0x2   :  { %s14_s7 = sshll.u32 %s91_s6, 4  ;;  %p44_p0 = scmp.ne.s32.totalorder %s128_s0, %s43_s10  ;;  %s15_s7 = int_to_ptr.vmem [resolvable:$true] %s14_s7 }
   0x3   :  { %p47_p1 = scmp.lt.u32.totalorder %s43_s10, %s128_s0 }
   0x5   :  { %p49_p2 = pnand %p47_p1, %p44_p0 }
   0x7   :  { %52 = shalt.err (!%p49_p2)
}
   0x8   :  { %s53_s15 = scalar_lea.vmem %s15_s7, 128  ;;  %p58_p4 = scmp.lt.s32.totalorder %s15_s7, %s15_s7 }
   0x9   :  { %p54_p3 = scmp.ne.s32.totalorder %s15_s7, %s53_s15  ;;  %p59_p5 = scmp.lt.s32.totalorder %s53_s15, %s53_s15 }
   0xb   :  { %p60_p6 = por %p59_p5, %p58_p4 }
   0xd   :  { %p61_p7 = pnand %p60_p6, %p54_p3 }
   0xf   :  { %64 = shalt.err (!%p61_p7)
}
  0x10   :  { %17 = dma.hbm_to_vmem [thread:$0]  %s128_s0, 128, %s15_s7, [#allocation3]  }
  0x11   :  { %87 = dma.done.wait [#allocation3], 128  }
  0x12   :  { %88 = vsyncadd [#allocation3], 4294967168  ;;  %v21_v0 = vld [vmem:[#allocation2] sm:$0xff]  ;;  %s92_s18 = smov 1   ;;  %s93_s19 = smov [#allocation5]  }
  0x13   :  { %22 = vrot.lane.b32.xlu0 %v21_v0, %s92_s18  ;;  %s31_s20 = sshll.u32 %s93_s19, 4  ;;  %s32_s20 = int_to_ptr.vmem [resolvable:$true] %s31_s20 }
  0x14   :  { %s65_s21 = scalar_lea.vmem %s32_s20, 128  ;;  %p70_p9 = scmp.lt.s32.totalorder %s32_s20, %s32_s20 }
  0x15   :  { %p66_p8 = scmp.ne.s32.totalorder %s32_s20, %s65_s21  ;;  %p71_p10 = scmp.lt.s32.totalorder %s65_s21, %s65_s21 }
  0x17   :  { %p72_p11 = por %p71_p10, %p70_p9 }
  0x19   :  { %p73_p12 = pnand %p72_p11, %p66_p8 }
  0x85   :  { %v23_v1 = vpop.permute.xlu0 %22 }
  0x86   :  { %24 = vst [vmem:[#allocation5] sm:$0xff] %v23_v1 }
  0x87   :  { %76 = shalt.err (!%p73_p12)
}
  0x88   :  { %s77_s0 = scalar_lea.hbm %s129_s1, 128 }
  0x89   :  { %p78_p13 = scmp.ne.s32.totalorder %s129_s1, %s77_s0  ;;  %p81_p0 = scmp.lt.u32.totalorder %s77_s0, %s129_s1 }
  0x8b   :  { %p83_p1 = pnand %p81_p0, %p78_p13 }
  0x8d   :  { %86 = shalt.err (!%p83_p1)
}
  0x8e   :  { %34 = dma.vmem_to_hbm [thread:$0]  %s32_s20, 128, %s129_s1, [#allocation4]  }
  0x8f   :  { %89 = dma.done.wait [#allocation4], 128  }
  0x90   :  { %90 = vsyncadd [#allocation4], 4294967168 }
  0x91   :  { %38 = vsyncpa [#allocation3], 1 }
  0x92   :  { %39 = vsyncpa [#allocation4], 1 }

</bundles_post_ra>
